<compile_context>
chip_gen: v7x
topology: tpu7x:2x2x1
jax: 0.10.0
libtpu: 0.0.40
codegen_flags: <defaults>
</compile_context>

<pallas_src>
import functools
import math

import jax
import jax.numpy as jnp
from jax.experimental import pallas as pl
from jax.experimental.pallas import tpu as pltpu


def _sce_kernel(
    x_ref,
    t_ref,
    out_ref,
    *,
    ignore_index: int,
    num_classes: int,
    hw: int,
    tile_hw: int,
    needs_bounds_mask: bool,
):
    """Per-tile:
      x_ref: (1, C, tile_hw) logits (any float dtype), classes on sublanes, positions on lanes.
      t_ref: (1, 1, tile_hw) int32 targets (lane-dense).
      out_ref: SMEM (2,) f32 accumulator -> [sum_nll, sum_smooth] over valid positions.
    """
    n = pl.program_id(0)
    j = pl.program_id(1)

    @pl.when(jnp.logical_and(n == 0, j == 0))
    def _init():
        out_ref[0] = 0.0
        out_ref[1] = 0.0

    x = x_ref[0].astype(jnp.float32)                 # (C, L) -- cast in-kernel (bf16 DMA ok)
    t = t_ref[0]                                     # (1, L) int32

    # validity: not ignore_index, and (for the partial last tile) inside the real HW extent
    valid = t != ignore_index                        # (1, L) bool
    if needs_bounds_mask:
        pos = jax.lax.broadcasted_iota(jnp.int32, t.shape, 1) + j * tile_hw
        valid = jnp.logical_and(valid, pos < hw)
    t_safe = jnp.where(valid, t, 0)                  # masked_fill(pad, 0)

    # numerically-stable log-sum-exp over the class (sublane) axis
    m = jnp.max(x, axis=0, keepdims=True)            # (1, L)
    xm = x - m                                       # (C, L)
    s = jnp.sum(jnp.exp(xm), axis=0, keepdims=True)  # (1, L)
    logs = jnp.log(s)                                # (1, L)

    # gather logit of the target class via one-hot compare (no dynamic gather on TPU).
    # Using xm everywhere folds out m:
    #   nll    = lse - x[target]          = logs - xm[target]
    #   smooth = C*lse - sum(x, axis=C)   = C*logs - sum(xm, axis=C)
    cls = jax.lax.broadcasted_iota(jnp.int32, x.shape, 0)                       # (C, L)
    picked = jnp.sum(jnp.where(cls == t_safe, xm, 0.0), axis=0, keepdims=True)  # (1, L)
    sum_xm = jnp.sum(xm, axis=0, keepdims=True)                                 # (1, L)

    nll = logs - picked
    smooth = float(num_classes) * logs - sum_xm

    # jnp.where (not multiply) so garbage out-of-bounds logits can't produce NaN*0
    nll = jnp.where(valid, nll, 0.0)
    smooth = jnp.where(valid, smooth, 0.0)

    out_ref[0] += jnp.sum(nll)
    out_ref[1] += jnp.sum(smooth)


def soft_cross_entropy_loss(
    logits: jax.Array,
    target: jax.Array,
    *,
    smooth_factor: float = 0.0,
    ignore_index: int | None = -100,
    reduction: str = "mean",
    tile_hw: int | None = None,
    target_tile_bytes: int = 2 << 20,   # ~2 MiB logits tile -> amortizes per-step overhead
) -> jax.Array:
    """Matches SoftCrossEntropyLoss(reduction, smooth_factor, ignore_index, dim=1).forward
    for NCHW logits [N, C, spatial...] and targets [N, spatial...]."""
    assert logits.ndim >= 3, "expected [N, C, spatial...] logits"
    N, C = int(logits.shape[0]), int(logits.shape[1])
    spatial = tuple(int(d) for d in logits.shape[2:])
    HW = int(math.prod(spatial))
    assert tuple(target.shape) == (N,) + spatial, "target must be [N, spatial...]"

    # Free reshapes of the native contiguous layout (no transpose, no pad, no host cast).
    x = logits.reshape(N, C, HW)
    t = target.reshape(N, 1, HW)
    if t.dtype != jnp.int32:
        t = t.astype(jnp.int32)

    ii = int(ignore_index) if ignore_index is not None else int(jnp.iinfo(jnp.int32).min)
    itemsize = int(jnp.dtype(x.dtype).itemsize)

    if tile_hw is None:
        if HW % 128 == 0:
            # biggest lane tile that keeps one logits buffer around ~target_tile_bytes
            cap = max(128, (int(target_tile_bytes) // max(1, C * itemsize)) // 128 * 128)
            tile_hw = min(cap, HW)
        else:
            # last block dim must be a 128-multiple or the full extent; odd HW -> full row
            tile_hw = HW
    else:
        assert tile_hw % 128 == 0 or tile_hw == HW, "tile_hw must be a multiple of 128 or == prod(spatial)"

    num_hw_tiles = pl.cdiv(HW, tile_hw)
    needs_bounds_mask = (HW % tile_hw) != 0

    kernel = functools.partial(
        _sce_kernel,
        ignore_index=ii,
        num_classes=C,
        hw=HW,
        tile_hw=int(tile_hw),
        needs_bounds_mask=bool(needs_bounds_mask),
    )

    cost = pl.CostEstimate(
        flops=6 * N * C * HW,
        transcendentals=N * C * HW,
        bytes_accessed=N * C * HW * itemsize + N * HW * 4 + 8,
    )

    sums = pl.pallas_call(
        kernel,
        out_shape=jax.ShapeDtypeStruct((2,), jnp.float32),
        grid=(N, num_hw_tiles),
        in_specs=[
            pl.BlockSpec((1, C, tile_hw), lambda n, j: (n, 0, j)),
            pl.BlockSpec((1, 1, tile_hw), lambda n, j: (n, 0, j)),
        ],
        out_specs=pl.BlockSpec(memory_space=pltpu.MemorySpace.SMEM),
        compiler_params=pltpu.CompilerParams(
            dimension_semantics=("arbitrary", "arbitrary"),
        ),
        cost_estimate=cost,
    )(x, t)

    nll_sum, smooth_sum = sums[0], sums[1]
    P = N * HW

    if reduction == "mean":
        # PyTorch .mean() divides by ALL positions (N*1*spatial), including ignored ones.
        nll_red = nll_sum / P
        smooth_red = smooth_sum / P
    elif reduction == "sum":
        nll_red = nll_sum
        smooth_red = smooth_sum
    else:
        # TODO(synk): reduction='none' returns a per-position tensor; only scalar
        # 'mean'/'sum' reductions are implemented here.
        raise NotImplementedError("only reduction in {'mean','sum'} is supported")

    eps = float(smooth_factor)
    return (1.0 - eps) * nll_red + (eps / C) * smooth_red


def _reference_loss(logits_nchw, target_nhw, smooth_factor, ignore_index):
    """Pure-JAX transcription of the PyTorch forward (reduction='mean')."""
    lp = jax.nn.log_softmax(logits_nchw, axis=1)
    pad = target_nhw == ignore_index
    tgt = jnp.where(pad, 0, target_nhw)
    lp = jnp.where(pad[:, None, :, :], 0.0, lp)
    tgt_e = tgt[:, None, :, :]
    nll = -jnp.take_along_axis(lp, tgt_e, axis=1)
    smooth = -jnp.sum(lp, axis=1, keepdims=True)
    nll = nll.mean()
    smooth = smooth.mean()
    C = logits_nchw.shape[1]
    return (1.0 - smooth_factor) * nll + (smooth_factor / C) * smooth


if __name__ == "__main__":
    key = jax.random.PRNGKey(0)
    k1, k2 = jax.random.split(key)

    N, C, H, W = 2, 4, 16, 16
    ignore_index = -100
    smooth_factor = 0.1

    logits = jax.random.normal(k1, (N, C, H, W), dtype=jnp.float32)
    target = jax.random.randint(k2, (N, H, W), 0, C, dtype=jnp.int32)
    # mark a few positions as ignored
    target = target.at[0, 0, :4].set(ignore_index)
    target = target.at[1, 3, 7].set(ignore_index)

    # 1) f32 path (HW = 256, single lane-dense tile per batch row)
    loss = soft_cross_entropy_loss(
        logits, target, smooth_factor=smooth_factor, ignore_index=ignore_index
    )
    loss = jax.block_until_ready(loss)
    ref = _reference_loss(logits, target, smooth_factor, ignore_index)
    assert jnp.allclose(loss, ref, rtol=1e-5, atol=1e-5), (loss, ref)

    # 2) bf16 logits path: bf16 is DMA'd directly, cast to f32 inside the kernel
    logits_bf16 = logits.astype(jnp.bfloat16)
    loss_bf = jax.block_until_ready(
        soft_cross_entropy_loss(
            logits_bf16, target, smooth_factor=smooth_factor, ignore_index=ignore_index
        )
    )
    ref_bf = _reference_loss(
        logits_bf16.astype(jnp.float32), target, smooth_factor, ignore_index
    )
    assert jnp.allclose(loss_bf, ref_bf, rtol=1e-4, atol=1e-4), (loss_bf, ref_bf)

    # 3) partial-tile path: HW = 384 with forced tile_hw = 256 -> last tile is
    #    out-of-bounds masked in-kernel (no host-side padding pass).
    H2, W2 = 16, 24
    k3, k4 = jax.random.split(k2)
    logits2 = jax.random.normal(k3, (N, C, H2, W2), dtype=jnp.float32)
    target2 = jax.random.randint(k4, (N, H2, W2), 0, C, dtype=jnp.int32)
    target2 = target2.at[0, :2, :].set(ignore_index)
    loss2 = jax.block_until_ready(
        soft_cross_entropy_loss(
            logits2, target2, smooth_factor=smooth_factor,
            ignore_index=ignore_index, tile_hw=256,
        )
    )
    ref2 = _reference_loss(logits2, target2, smooth_factor, ignore_index)
    assert jnp.allclose(loss2, ref2, rtol=1e-5, atol=1e-5), (loss2, ref2)

    print("KERNEL_OK")
</pallas_src>

<mosaic_0001>
module attributes {stable_mosaic.version = 11 : i64} {
  func.func @_sce_kernel(%arg0: i32, %arg1: i32, %arg2: memref<1x4x256xf32, #tpu.memory_space<vmem>>, %arg3: memref<1x1x256xi32, #tpu.memory_space<vmem>>, %arg4: memref<2xf32, #tpu.memory_space<smem>>) attributes {dimension_semantics = [#tpu.dimension_semantics<arbitrary>, #tpu.dimension_semantics<arbitrary>], iteration_bounds = array<i64: 2, 1>, scalar_prefetch = 0 : i64, scratch_operands = 0 : i64, tpu.core_type = #tpu.core_type<tc>, window_params = [{transform_indices = @transform_0, window_bounds = array<i64: 1, 4, 256>}, {transform_indices = @transform_1, window_bounds = array<i64: 1, 1, 256>}, {transform_indices = @transform_2, window_bounds = array<i64: 2>}]} {
    %c0_i32 = arith.constant 0 : i32
    %0 = arith.cmpi eq, %arg0, %c0_i32 : i32
    %c0_i32_0 = arith.constant 0 : i32
    %1 = arith.cmpi eq, %arg1, %c0_i32_0 : i32
    %2 = arith.andi %0, %1 : i1
    %3 = arith.extui %2 : i1 to i32
    %c0_i32_1 = arith.constant 0 : i32
    %4 = arith.cmpi ne, %3, %c0_i32_1 : i32
    scf.if %4 {
      %cst_20 = arith.constant 0.000000e+00 : f32
      %c0_21 = arith.constant 0 : index
      %52 = memref.load %arg4[%c0_21] : memref<2xf32, #tpu.memory_space<smem>>
      memref.store %cst_20, %arg4[%c0_21] : memref<2xf32, #tpu.memory_space<smem>>
      %cst_22 = arith.constant 0.000000e+00 : f32
      %c1_23 = arith.constant 1 : index
      %53 = memref.load %arg4[%c1_23] : memref<2xf32, #tpu.memory_space<smem>>
      memref.store %cst_22, %arg4[%c1_23] : memref<2xf32, #tpu.memory_space<smem>>
    } else {
    }
    %c0 = arith.constant 0 : index
    %c0_2 = arith.constant 0 : index
    %c0_3 = arith.constant 0 : index
    %5 = vector.load %arg2[%c0, %c0_2, %c0_3] : memref<1x4x256xf32, #tpu.memory_space<vmem>>, vector<1x4x256xf32>
    %6 = vector.shape_cast %5 : vector<1x4x256xf32> to vector<4x256xf32>
    %c0_4 = arith.constant 0 : index
    %c0_5 = arith.constant 0 : index
    %c0_6 = arith.constant 0 : index
    %7 = vector.load %arg3[%c0_4, %c0_5, %c0_6] : memref<1x1x256xi32, #tpu.memory_space<vmem>>, vector<1x1x256xi32>
    %8 = vector.shape_cast %7 : vector<1x1x256xi32> to vector<1x256xi32>
    %c-100_i32 = arith.constant -100 : i32
    %9 = vector.broadcast %c-100_i32 : i32 to vector<1x256xi32>
    %10 = arith.cmpi ne, %8, %9 : vector<1x256xi32>
    %c0_i32_7 = arith.constant 0 : i32
    %11 = vector.broadcast %c0_i32_7 : i32 to vector<1x256xi32>
    %12 = arith.select %10, %8, %11 : vector<1x256xi1>, vector<1x256xi32>
    %cst = arith.constant dense<0xFF800000> : vector<256xf32>
    %13 = vector.multi_reduction <maximumf>, %6, %cst [0] : vector<4x256xf32> to vector<256xf32>
    %14 = vector.shape_cast %13 : vector<256xf32> to vector<1x256xf32>
    %15 = vector.broadcast %14 : vector<1x256xf32> to vector<4x256xf32>
    %16 = arith.subf %6, %15 : vector<4x256xf32>
    %17 = math.exp %16 : vector<4x256xf32>
    %cst_8 = arith.constant dense<0.000000e+00> : vector<256xf32>
    %18 = vector.multi_reduction <add>, %17, %cst_8 [0] : vector<4x256xf32> to vector<256xf32>
    %19 = vector.shape_cast %18 : vector<256xf32> to vector<1x256xf32>
    %20 = math.log %19 : vector<1x256xf32>
    %21 = tpu.iota {dimensions = array<i32: 0>} : vector<4x256xi32>
    %22 = vector.broadcast %12 : vector<1x256xi32> to vector<4x256xi32>
    %23 = arith.cmpi eq, %21, %22 : vector<4x256xi32>
    %cst_9 = arith.constant 0.000000e+00 : f32
    %24 = vector.broadcast %cst_9 : f32 to vector<4x256xf32>
    %25 = arith.select %23, %16, %24 : vector<4x256xi1>, vector<4x256xf32>
    %cst_10 = arith.constant dense<0.000000e+00> : vector<256xf32>
    %26 = vector.multi_reduction <add>, %25, %cst_10 [0] : vector<4x256xf32> to vector<256xf32>
    %27 = vector.shape_cast %26 : vector<256xf32> to vector<1x256xf32>
    %cst_11 = arith.constant dense<0.000000e+00> : vector<256xf32>
    %28 = vector.multi_reduction <add>, %16, %cst_11 [0] : vector<4x256xf32> to vector<256xf32>
    %29 = vector.shape_cast %28 : vector<256xf32> to vector<1x256xf32>
    %30 = arith.subf %20, %27 : vector<1x256xf32>
    %cst_12 = arith.constant 4.000000e+00 : f32
    %31 = vector.broadcast %cst_12 : f32 to vector<1x256xf32>
    %32 = arith.mulf %31, %20 : vector<1x256xf32>
    %33 = arith.subf %32, %29 : vector<1x256xf32>
    %cst_13 = arith.constant 0.000000e+00 : f32
    %34 = vector.broadcast %cst_13 : f32 to vector<1x256xf32>
    %35 = arith.select %10, %30, %34 : vector<1x256xi1>, vector<1x256xf32>
    %cst_14 = arith.constant 0.000000e+00 : f32
    %36 = vector.broadcast %cst_14 : f32 to vector<1x256xf32>
    %37 = arith.select %10, %33, %36 : vector<1x256xi1>, vector<1x256xf32>
    %c0_15 = arith.constant 0 : index
    %38 = memref.load %arg4[%c0_15] : memref<2xf32, #tpu.memory_space<smem>>
    %39 = vector.shape_cast %35 : vector<1x256xf32> to vector<1x1x256xf32>
    %cst_16 = arith.constant dense<0.000000e+00> : vector<1xf32>
    %40 = vector.multi_reduction <add>, %39, %cst_16 [1, 2] : vector<1x1x256xf32> to vector<1xf32>
    %41 = vector.shape_cast %40 : vector<1xf32> to vector<1x1x1xf32>
    %42 = vector.extract %41[0, 0, 0] : f32 from vector<1x1x1xf32>
    %43 = arith.addf %38, %42 : f32
    %c0_17 = arith.constant 0 : index
    %44 = memref.load %arg4[%c0_17] : memref<2xf32, #tpu.memory_space<smem>>
    memref.store %43, %arg4[%c0_17] : memref<2xf32, #tpu.memory_space<smem>>
    %c1 = arith.constant 1 : index
    %45 = memref.load %arg4[%c1] : memref<2xf32, #tpu.memory_space<smem>>
    %46 = vector.shape_cast %37 : vector<1x256xf32> to vector<1x1x256xf32>
    %cst_18 = arith.constant dense<0.000000e+00> : vector<1xf32>
    %47 = vector.multi_reduction <add>, %46, %cst_18 [1, 2] : vector<1x1x256xf32> to vector<1xf32>
    %48 = vector.shape_cast %47 : vector<1xf32> to vector<1x1x1xf32>
    %49 = vector.extract %48[0, 0, 0] : f32 from vector<1x1x1xf32>
    %50 = arith.addf %45, %49 : f32
    %c1_19 = arith.constant 1 : index
    %51 = memref.load %arg4[%c1_19] : memref<2xf32, #tpu.memory_space<smem>>
    memref.store %50, %arg4[%c1_19] : memref<2xf32, #tpu.memory_space<smem>>
    return
  }
  func.func @transform_0(%arg0: i32, %arg1: i32) -> (i32, i32, i32) {
    %c0_i32 = arith.constant 0 : i32
    %c0_i32_0 = arith.constant 0 : i32
    return %arg0, %c0_i32, %arg1 : i32, i32, i32
  }
  func.func @transform_1(%arg0: i32, %arg1: i32) -> (i32, i32, i32) {
    %c0_i32 = arith.constant 0 : i32
    %c0_i32_0 = arith.constant 0 : i32
    return %arg0, %c0_i32, %arg1 : i32, i32, i32
  }
  func.func @transform_2(%arg0: i32, %arg1: i32) -> i32 {
    %c0_i32 = arith.constant 0 : i32
    %c0_i32_0 = arith.constant 0 : i32
    return %c0_i32 : i32
  }
}

</mosaic_0001>

<bundles_post_ra>
// kernel: tpu_custom_call.1
= control target key start
LH: loop header
LB: loop body
LE: loop exit
PB: predicated region body
PF: predicated region fallthrough
CT: control target
= control target key end

     0   :  { %7 = vsyncpa [#allocation3], 0  ;;  %s974_s0 = inlined_call_operand.hbm [shape: f32[2,4,256], index: 0, kind: input, shape index: {}]   ;;  %s975_s1 = inlined_call_operand.hbm [shape: s32[2,1,256], index: 1, kind: input, shape index: {}]   ;;  %s976_s2 = inlined_call_operand.hbm [shape: f32[2], index: 2, kind: output, shape index: {}]  }
   0x1   :  { %9 = vsyncpa [#allocation3 + $0x1], 0 }
   0x2   :  { %10 = vsyncpa [#allocation6], 0 }
   0x3   :  { %12 = vsyncpa [#allocation6 + $0x1], 0 }
   0x4   :  { %13 = vsyncpa [#allocation4], 0  ;;  %s761_s9 = smov 0   ;;  %s763_s10 = smov 0  }
   0x5   :  { %s765_s11 = smov 0   ;;  %s767_s12 = smov 0  }
   0x6   :  { %s769_s13 = smov 0   ;;  %s771_s14 = smov 0  }
   0x7 LB: > { %s506_s15 = sadd.s32 4294967295, %s739_s14   ;;  %s31_s16 = sadd.s32 1, %s735_s13  ;;  %s739_s14 = sphi %s771_s14, %s19_s14   ;;  %s735_s13 = sphi %s769_s13, %s990_s13   ;;  %s731_s12 = sphi %s767_s12, %s989_s12   ;;  %s727_s11 = sphi %s765_s11, %s988_s11   ;;  %s723_s10 = sphi %s763_s10, %s987_s10   ;;  %s719_s9 = sphi %s761_s9, %s986_s9  }
   0x8   : > { %p33_p0 = scmp.ge.s32.totalorder %s31_s16, 2  ;;  %s40_s17 = sadd.s32 1, %s727_s11 }
   0x9   : > { %p47_p1 = scmp.ne.s32.totalorder %s727_s11, %s723_s10  ;;  %p48_p2 = scmp.eq.s32.totalorder %s739_s14, 0 }
   0xa   : > { %s992_s16 = smov (%p33_p0, %s31_s16), 0  ;;  %p53_p4 = scmp.ne.s32.totalorder %s723_s10, %s719_s9 }
   0xb   : > { %p797_p3 = por %p48_p2, %p47_p1  ;;  %s35_s19 = ssub.s32 %s735_s13, %s992_s16 }
   0xc   : > { %p54_p5 = scmp.eq.s32.totalorder %s506_s15, 0  ;;  %p38_p6 = scmp.eq.s32.totalorder %s35_s19, 0 }
   0xd   : > { %p548_p8 = scmp.lt.s32.totalorder %s739_s14, 2  ;;  %s815_s22 = sand.u32 1, %s727_s11  }
   0xe   : > { %p806_p7 = por %p54_p5, %p53_p4  ;;  %s524_s23 = sshll.u32 %s735_s13, 7 }
   0xf   : > { %s812_s21 = scalar_select %p38_p6, %s727_s11, %s40_s17  }
  0x10   : > { %s979_s20 = scalar_select %p806_p7, 1, 0 }
  0x11   : > { %s509_s24 = sshll.u32 %s815_s22, 3  ;;  %s822_s27 = scalar_lea.hbm %s974_s0, %s524_s23 }
  0x12   : > { %s130_s28 = scalar_lea.vmem [#allocation2], %s509_s24  ;;  %p826_p9 = pnand %p548_p8, %p797_p3 }
  0x13   : > { %s140_s29 = sshll.u32 %s130_s28, 4  ;;  %s127_s3 = scalar_lea.sflag [#allocation3], %s815_s22  ;;  %s830_s29 = int_to_ptr.vmem [resolvable:$true] %s140_s29 }
  0x14   : > { %s609_s4 = scalar_lea.hbm %s822_s27, 128  ;;  %p611_p13 = pneg %p826_p9 }
  0x15   : > { %p610_p12 = scmp.ne.s32.totalorder %s822_s27, %s609_s4  ;;  %s614_s7 = scalar_lea.hbm %s974_s0, 256 }
  0x16   : > { %p615_p2 = scmp.lt.u32.totalorder %s822_s27, %s974_s0  ;;  %p616_p3 = scmp.lt.u32.totalorder %s614_s7, %s609_s4 }
  0x17   : > { %p612_p0 = pnand %p611_p13, %p610_p12  ;;  %p618_p5 = scmp.lt.u32.totalorder %s609_s4, %s822_s27 }
  0x18   : > { %p617_p4 = por %p616_p3, %p615_p2 }
  0x19   : > { %p613_p1 = pneg %p612_p0 }
  0x1a   : > { %p619_p6 = por %p618_p5, %p617_p4 }
  0x1c   : > { %p620_p8 = pnand %p619_p6, %p613_p1 }
  0x1e   : > { %623 = shalt.err (!%p620_p8)
}
  0x1f   : > { %s624_s17 = scalar_lea.vmem %s830_s29, 128  ;;  %s741_s18 = smov [#allocation2]  }
  0x20   : > { %p625_p12 = scmp.ne.s32.totalorder %s830_s29, %s624_s17  ;;  %s629_s19 = sshll.u32 %s741_s18, 4  ;;  %s630_s19 = int_to_ptr.vmem [resolvable:$false] %s629_s19 }
  0x21   : > { %s631_s23 = scalar_lea.vmem %s630_s19, 256  ;;  %p632_p11 = scmp.lt.s32.totalorder %s830_s29, %s630_s19 }
  0x22   : > { %p627_p0 = pnand %p625_p12, %p611_p13  ;;  %p633_p2 = scmp.lt.s32.totalorder %s631_s23, %s624_s17 }
  0x24   : > { %p628_p10 = pneg %p627_p0  ;;  %p634_p3 = por %p633_p2, %p632_p11 }
  0x26   : > { %p635_p4 = pnand %p634_p3, %p628_p10 }
  0x28   : > { %638 = shalt.err (!%p635_p4)
}
  0x29   : > { %544 = dma.hbm_to_vmem [thread:$0]  (!%p826_p9), %s822_s27, 128, %s830_s29, %s127_s3  }
  0x2a   : > { %p981_p1 = scmp.lt.s32.totalorder %s739_s14, 3  ;;  %p982_p5 = scmp.ge.s32.totalorder %s739_s14, 1 }
  0x2b   : > { %s512_s25 = sshll.u32 %s815_s22, 1  ;;  %s525_s26 = sshll.u32 %s735_s13, 5 }
  0x2c   : > { %p864_p6 = pnand %p982_p5, %p981_p1  ;;  %s873_s5 = scalar_lea.hbm %s975_s1, %s525_s26 }
  0x2d   : > { %s151_s6 = scalar_lea.vmem [#allocation5], %s512_s25  ;;  %s148_s27 = scalar_lea.sflag [#allocation6], %s815_s22 }
  0x2e   : > { %s983_s24 = scalar_select %p864_p6, 1, 0 }
  0x2f   : > { %s161_s7 = sshll.u32 %s151_s6, 4  ;;  %s639_s29 = scalar_lea.hbm %s873_s5, 32  ;;  %s162_s7 = int_to_ptr.vmem [resolvable:$true] %s161_s7 }
  0x30   : > { %p640_p10 = scmp.ne.s32.totalorder %s873_s5, %s639_s29  ;;  %s644_s9 = scalar_lea.hbm %s975_s1, 64 }
  0x31   : > { %p645_p12 = scmp.lt.u32.totalorder %s873_s5, %s975_s1  ;;  %p646_p0 = scmp.lt.u32.totalorder %s644_s9, %s639_s29 }
  0x32   : > { %p642_p11 = pnand %p640_p10, %p611_p13  ;;  %p648_p3 = scmp.lt.u32.totalorder %s639_s29, %s873_s5 }
  0x33   : > { %p647_p2 = por %p646_p0, %p645_p12 }
  0x34   : > { %p643_p8 = pneg %p642_p11 }
  0x35   : > { %p649_p4 = por %p648_p3, %p647_p2 }
  0x37   : > { %p650_p1 = pnand %p649_p4, %p643_p8 }
  0x39   : > { %653 = shalt.err (!%p650_p1)
}
  0x3a   : > { %s654_s22 = scalar_lea.vmem %s162_s7, 32  ;;  %s742_s19 = smov [#allocation5]  }
  0x3b   : > { %p655_p5 = scmp.ne.s32.totalorder %s162_s7, %s654_s22  ;;  %s659_s23 = sshll.u32 %s742_s19, 4  ;;  %s660_s23 = int_to_ptr.vmem [resolvable:$false] %s659_s23 }
  0x3c   : > { %s661_s25 = scalar_lea.vmem %s660_s23, 64  ;;  %p662_p7 = scmp.lt.s32.totalorder %s162_s7, %s660_s23 }
  0x3d   : > { %p657_p10 = pnand %p655_p5, %p611_p13  ;;  %p663_p6 = scmp.lt.s32.totalorder %s661_s25, %s654_s22 }
  0x3f   : > { %p658_p11 = pneg %p657_p10  ;;  %p664_p0 = por %p663_p6, %p662_p7 }
  0x41   : > { %p665_p12 = pnand %p664_p0, %p658_p11 }
  0x43   : > { %668 = shalt.err (!%p665_p12)
}
  0x44   : > { %547 = dma.hbm_to_vmem [thread:$0]  (!%p826_p9), %s873_s5, 32, %s162_s7, %s148_s27  }
  0x45   : > { %p984_p8 = scmp.ne.s32.totalorder %s983_s24, 0 }
  0x46   : > { %s172_s26 = sand.u32 (!%p984_p8), 1, %s723_s10   ;;  %p985_p13 = scmp.ne.s32.totalorder (!%p984_p8), %s979_s20, 0 }
  0x47   : > { %170 = sbr.rel (%p984_p8) target bundleno = 374 (0x176), region = 28  ;;  %s516_s28 = sshll.u32 (!%p984_p8), %s172_s26, 3 }
  0x48   : > { %s173_s4 = scalar_lea.sflag (!%p984_p8), [#allocation3], %s172_s26  ;;  %s176_s6 = scalar_lea.vmem (!%p984_p8), [#allocation2], %s516_s28 }
  0x4e   : > { %706 = dma.done.wait (%p985_p13), %s173_s4, 128  }
  0x4f   : > { %708 = vsyncadd (%p985_p13), %s173_s4, 4294967168  ;;  %s517_s29 = sshll.u32 %s172_s26, 1  ;;  %s182_s3 = scalar_lea.sflag [#allocation6], %s172_s26 }
  0x50   : > { %s185_s30 = scalar_lea.vmem [#allocation5], %s517_s29 }
  0x51   : > { %710 = dma.done.wait (%p985_p13), %s182_s3, 32  }
  0x52   : > { %712 = vsyncadd (%p985_p13), %s182_s3, 4294967264  ;;  %vm225_vm0 = vcmask 1043456   ;;  %v218_v0 = vld [vmem:[%s176_s6] sm:$0xff]  ;;  %v268_v13 = vlaneseq  ;;  %v908_v16 = vld [vmem:[%s185_s30] sm:$0x3]  ;;  %vm369_vm4 = vcmask 1040384  }
  0x53   : > { %v223_v1 = vcombine.high %v218_v0, %v218_v0  ;;  %v226_v2 = vsel %vm225_vm0, %v218_v0, -inf  ;;  %vm220_vm1 = vcmp.ne.s32.totalorder %v908_v16, 4294967196  ;;  %p208_p7 = scmp.eq.s32.totalorder %s731_s12, 0  ;;  %s744_s20 = smov 0.0  }
  0x54   : > { %v227_v3 = vrot.slane %v226_v2, 4  ;;  %v910_v18 = vshrl.u32 %v268_v13, 7  ;;  %v221_v22 = vsel %vm220_vm1, %v908_v16, 0  ;;  %p549_p9 = scmp.eq.s32.totalorder %s506_s15, 1  ;;  %s669_s18 = scalar_lea.hbm %s976_s2, 16 }
  0x55   : > { %v233_v4 = vsel %vm225_vm0, %v223_v1, -inf  ;;  %535 = sst [smem:[#allocation7]] (%p208_p7), %s744_s20  ;;  %p670_p6 = scmp.ne.s32.totalorder %s976_s2, %s669_s18 }
  0x56   : > { %v228_v5 = vmax.f32 %v226_v2, %v227_v3  ;;  %v234_v6 = vrot.slane %v233_v4, 4  ;;  %v914_v21 = vsub.s32 0, %v910_v18  ;;  %v920_v24 = vsub.s32 1, %v910_v18  ;;  %536 = sst [smem:[#allocation7 + $0x1]] (%p208_p7), %s744_s20  ;;  %s357_s12 = sld [smem:[#allocation7]] }
  0x57   : > { %s519_s24 = sld [smem:[#allocation7 + $0x1]]  ;;  %p671_p2 = pnand %p670_p6, %p549_p9 }
  0x58   : > { %v229_v7 = vrot.slane %v228_v5, 2  ;;  %v235_v8 = vmax.f32 %v233_v4, %v234_v6  ;;  %v273_v25 = vrot.slane %v221_v22, %v914_v21  ;;  %v277_v26 = vrot.slane %v221_v22, %v920_v24  ;;  %p675_p4 = scmp.lt.u32.totalorder %s669_s18, %s976_s2 }
  0x59   : > { %v743_v4 = vmov 1966171168   ;;  %p672_p3 = pneg %p671_p2 }
  0x5a   : > { %v230_v9 = vmax.f32 %v228_v5, %v229_v7  ;;  %v236_v10 = vrot.slane %v235_v8, 2  ;;  %vm278_vm2 = vcmp.eq.s32.totalorder %v910_v18, %v273_v25  ;;  %vm279_vm3 = vcmp.eq.s32.totalorder %v910_v18, %v277_v26 }
  0x5b   : > { %v323_v5 = vunpack.c.l.s4 %v743_v4  ;;  %p677_p1 = pnand %p675_p4, %p672_p3 }
  0x5c   : > { %v231_v11 = vrot.slane %v230_v9, 1  ;;  %v237_v12 = vmax.f32 %v235_v8, %v236_v10 }
  0x5e   : > { %v232_v14 = vmax.f32 %v230_v9, %v231_v11  ;;  %v238_v15 = vrot.slane %v237_v12, 1 }
  0x60   : > { %v239_v17 = vmax.f32 %v237_v12, %v238_v15  ;;  %v324_v12 = vunpack.c.0.s8 %v323_v5 }
  0x62   : > { %v242_v19 = vcombine.low %v232_v14, %v239_v17 }
  0x64   : > { %v244_v20 = vsub.f32 %v218_v0, %v242_v19 }
  0x66   : > { %v245_v23 = vmul.f32 1.442695, %v244_v20  ;;  %v281_v27 = vcombine.high %v244_v20, %v244_v20  ;;  %v283_v28 = vsel %vm278_vm2, %v244_v20, 0.0  ;;  %v299_v36 = vsel %vm225_vm0, %v244_v20, 0.0 }
  0x67   : > { %v285_v31 = vsel %vm225_vm0, %v283_v28, 0.0  ;;  %v300_v43 = vrot.slane %v299_v36, 4 }
  0x68   : > { %603 = vpow2.f32 %v245_v23  ;;  %v284_v29 = vsel %vm279_vm3, %v281_v27, 0.0  ;;  %v286_v38 = vrot.slane %v285_v31, 4  ;;  %v306_v41 = vsel %vm225_vm0, %v281_v27, 0.0 }
  0x69   : > { %v292_v35 = vsel %vm225_vm0, %v284_v29, 0.0  ;;  %v307_v47 = vrot.slane %v306_v41, 4  ;;  %v301_v51 = vadd.f32 %v300_v43, %v299_v36  ;;  %v327_v23 = vsub.s32 %v324_v12, %v910_v18 }
  0x6a   : > { %v293_v42 = vrot.slane %v292_v35, 4  ;;  %v287_v46 = vadd.f32 %v286_v38, %v285_v31 }
  0x6b   : > { %v308_v55 = vadd.f32 %v307_v47, %v306_v41  ;;  %v302_v59 = vrot.slane %v301_v51, 2 }
  0x6c   : > { %v294_v50 = vadd.f32 %v293_v42, %v292_v35  ;;  %v288_v54 = vrot.slane %v287_v46, 2 }
  0x6d   : > { %v309_v62 = vrot.slane %v308_v55, 2  ;;  %v303_v0 = vadd.f32 %v302_v59, %v301_v51 }
  0x6e   : > { %v295_v58 = vrot.slane %v294_v50, 2  ;;  %v289_v61 = vadd.f32 %v288_v54, %v287_v46 }
  0x6f   : > { %v310_v2 = vadd.f32 %v309_v62, %v308_v55  ;;  %v304_v6 = vrot.slane %v303_v0, 1 }
  0x70   : > { %v296_v63 = vadd.f32 %v295_v58, %v294_v50  ;;  %v290_v1 = vrot.slane %v289_v61, 1 }
  0x71   : > { %v311_v8 = vrot.slane %v310_v2, 1  ;;  %v305_v13 = vadd.f32 %v304_v6, %v303_v0 }
  0x72   : > { %v604_v30 = vpop.eup %603  ;;  %v297_v3 = vrot.slane %v296_v63, 1  ;;  %v291_v7 = vadd.f32 %v290_v1, %v289_v61 }
  0x73   : > { %v248_v32 = vcombine.high %v604_v30, %v604_v30  ;;  %v250_v33 = vsel %vm225_vm0, %v604_v30, 0.0  ;;  %v312_v19 = vadd.f32 %v311_v8, %v310_v2 }
  0x74   : > { %v251_v34 = vrot.slane %v250_v33, 4  ;;  %v298_v11 = vadd.f32 %v297_v3, %v296_v63 }
  0x75   : > { %v257_v37 = vsel %vm225_vm0, %v248_v32, 0.0 }
  0x76   : > { %v252_v39 = vadd.f32 %v251_v34, %v250_v33  ;;  %v258_v40 = vrot.slane %v257_v37, 4 }
  0x78   : > { %v253_v44 = vrot.slane %v252_v39, 2  ;;  %v259_v45 = vadd.f32 %v258_v40, %v257_v37 }
  0x7a   : > { %v254_v48 = vadd.f32 %v253_v44, %v252_v39  ;;  %v260_v49 = vrot.slane %v259_v45, 2 }
  0x7c   : > { %v255_v52 = vrot.slane %v254_v48, 1  ;;  %v261_v53 = vadd.f32 %v260_v49, %v259_v45 }
  0x7e   : > { %v256_v56 = vadd.f32 %v255_v52, %v254_v48  ;;  %v262_v57 = vrot.slane %v261_v53, 1 }
  0x80   : > { %v263_v60 = vadd.f32 %v262_v57, %v261_v53  ;;  %605 = vlog2.f32 %v256_v56 }
  0x82   : > { %607 = vlog2.f32 %v263_v60 }
  0x8a   : > { %v606_v9 = vpop.eup %605 }
  0x8b   : > { %v265_v10 = vmul.f32 0.6931472, %v606_v9 }
  0x8c   : > { %v608_v14 = vpop.eup %607 }
  0x8d   : > { %v267_v15 = vmul.f32 0.6931472, %v608_v14  ;;  %v313_v17 = vsub.f32 %v265_v10, %v291_v7  ;;  %v315_v20 = vmul.f32 4.0, %v265_v10 }
  0x8f   : > { %v314_v22 = vsub.f32 %v267_v15, %v298_v11  ;;  %v316_v25 = vmul.f32 4.0, %v267_v15  ;;  %v317_v26 = vsub.f32 %v315_v20, %v305_v13 }
  0x91   : > { %v321_v27 = vcombine.low %v313_v17, %v314_v22  ;;  %v318_v28 = vsub.f32 %v316_v25, %v312_v19 }
  0x93   : > { %v328_v29 = vrot.slane %v321_v27, %v327_v23  ;;  %v340_v30 = vcombine.low %v317_v26, %v318_v28 }
  0x95   : > { %v335_v31 = vrot.slane %v328_v29, %v327_v23  ;;  %v347_v32 = vrot.slane %v340_v30, %v327_v23 }
  0x97   : > { %v337_v33 = vsel %vm220_vm1, %v335_v31, 0.0  ;;  %v354_v34 = vrot.slane %v347_v32, %v327_v23 }
  0x98   : > { %v362_v35 = vrot.slane %v337_v33, %v914_v21  ;;  %v366_v36 = vrot.slane %v337_v33, %v920_v24 }
  0x99   : > { %v356_v18 = vsel %vm220_vm1, %v354_v34, 0.0 }
  0x9a   : > { %v370_v37 = vsel %vm369_vm4, %v362_v35, 0.0  ;;  %v371_v38 = vsel %vm369_vm4, %v366_v36, 0.0  ;;  %v390_v39 = vrot.slane %v356_v18, %v914_v21  ;;  %v394_v40 = vrot.slane %v356_v18, %v920_v24 }
  0x9b   : > { %v372_v41 = vadd.f32 %v371_v38, %v370_v37 }
  0x9c   : > { %v397_v42 = vsel %vm369_vm4, %v390_v39, 0.0  ;;  %v398_v43 = vsel %vm369_vm4, %v394_v40, 0.0 }
  0x9d   : > { %373 = vadd.xlane.f32.xlu0 %v372_v41  ;;  %v399_v44 = vadd.f32 %v398_v43, %v397_v42 }
  0xa1   : > { %400 = vadd.xlane.f32.xlu0 %v399_v44 }
 0x12a   : > { %v374_v45 = vpop.xlane.xlu0 %373 }
 0x12b   : > { %v375_v46 = vrot.slane %v374_v45, 4 }
 0x12d   : > { %v376_v16 = vadd.f32 %v375_v46, %v374_v45 }
 0x12e   : > { %v401_v47 = vpop.xlane.xlu0 %400 }
 0x12f   : > { %v377_v48 = vrot.slane %v376_v16, 2  ;;  %v402_v49 = vrot.slane %v401_v47, 4 }
 0x131   : > { %v403_v50 = vadd.f32 %v402_v49, %v401_v47  ;;  %v378_v21 = vadd.f32 %v377_v48, %v376_v16 }
 0x133   : > { %v404_v24 = vrot.slane %v403_v50, 2  ;;  %v379_v51 = vrot.slane %v378_v21, 1 }
 0x135   : > { %v405_v52 = vadd.f32 %v404_v24, %v403_v50  ;;  %v380_v53 = vadd.f32 %v379_v51, %v378_v21 }
 0x137   : > { %527 = vpush %v380_v53  ;;  %v406_v54 = vrot.slane %v405_v52, 1 }
 0x139   : > { %v407_v55 = vadd.f32 %v406_v54, %v405_v52 }
 0x13b   : > { %529 = vpush %v407_v55 }
 0x168   : > { %s528_s5 = spop %527 }
 0x169   : > { %s382_s7 = sadd.f32 %s528_s5, %s357_s12 }
 0x16b   : > { %384 = sst [smem:[#allocation7]] %s382_s7 }
 0x16c   : > { %s530_s27 = spop %529 }
 0x16d   : > { %s409_s8 = sadd.f32 %s530_s27, %s519_s24 }
 0x16f   : > { %411 = sst [smem:[#allocation7 + $0x1]] %s409_s8 }
 0x170   : > { %680 = shalt.err (!%p677_p1)
}
 0x171   : > { %s745_s26 = smov [#allocation7]  }
 0x172   : > { %538 = dma.smem_to_hbm (%p549_p9), %s745_s26, 16, %s976_s2, [#allocation4]  }
 0x173   : > { %714 = dma.done.wait (%p549_p9), [#allocation4], 16  }
 0x174   : > { %716 = vsyncadd (%p549_p9), [#allocation4], 4294967280 }
 0x175   : > { %425 = sfence }
 0x176 PF: > { %s19_s14 = sadd.s32 1, %s739_s14   ;;  %s986_s9 = smov %s723_s10 }
 0x177   : > { %p16_p5 = scmp.ge.s32.totalorder %s19_s14, 4   ;;  %s987_s10 = smov %s727_s11 }
 0x178   : > { %s988_s11 = smov %s812_s21  ;;  %s989_s12 = smov %s735_s13 }
 0x179   : > { %s990_s13 = smov %s992_s16  ;;  %18 = sbr.rel (!%p16_p5) target bundleno = 7 (0x7), region = 86 }
 0x180   :  { %431 = vsyncpa [#allocation3], 1 }
 0x181   :  { %433 = vsyncpa [#allocation3 + $0x1], 1 }
 0x182   :  { %434 = vsyncpa [#allocation6], 1 }
 0x183   :  { %436 = vsyncpa [#allocation6 + $0x1], 1 }
 0x184   :  { %437 = vsyncpa [#allocation4], 1 }
 0x185   :  { %439 = vsyncpa [#allocation4 + $0x1], 1 }

</bundles_post_ra>
